<compile_context>
chip_gen: v5e
topology: v5e:2x2
jax: 0.10.0
libtpu: 0.0.40
codegen_flags: <defaults>
</compile_context>

<pallas_src>
import jax
import jax.numpy as jnp
from jax.experimental import pallas as pl
from jax.experimental.pallas import tpu as pltpu

LANE = 128  # lane width: feature dims padded to multiples of this


def _rup(n, m):
    return ((n + m - 1) // m) * m


def _pad2d(a, rows, cols, dtype):
    a = a.astype(dtype)
    return jnp.pad(a, ((0, rows - a.shape[0]), (0, cols - a.shape[1])))


def mlp_kernel(x_ref,
               w1_ref, b1_ref,
               w2_ref, b2_ref,
               w3_ref, b3_ref,
               w4_ref, b4_ref,
               o_ref):
    # Layer 1 (dominant cost): x arrives as f32 straight from HBM; cast to
    # bf16 on the VPU (free under mem-bound slack) and hit the MXU with
    # bf16 x / bf16 W1, accumulating in f32.
    x = x_ref[...].astype(jnp.bfloat16)
    h = jnp.dot(x, w1_ref[...], preferred_element_type=jnp.float32)
    h = jnp.maximum(h + b1_ref[...], 0.0)            # bias/ReLU in f32 (VPU)

    # Layers 2-3: bf16 MXU inputs, f32 accumulation, lane-dense (128-padded).
    h = jnp.dot(h.astype(jnp.bfloat16), w2_ref[...],
                preferred_element_type=jnp.float32)
    h = jnp.maximum(h + b2_ref[...], 0.0)

    h = jnp.dot(h.astype(jnp.bfloat16), w3_ref[...],
                preferred_element_type=jnp.float32)
    h = jnp.maximum(h + b3_ref[...], 0.0)

    # Layer 4: no activation; lane-dense padded output store.
    out = jnp.dot(h.astype(jnp.bfloat16), w4_ref[...],
                  preferred_element_type=jnp.float32)
    o_ref[...] = (out + b4_ref[...]).astype(o_ref.dtype)


def prepare_params(params):
    """One-time weight prep (pad to lane-dense widths, cast weights to bf16).

    Zero padding keeps the math exact: padded bias entries are 0 and padded
    weight rows/cols are 0, so padded hidden channels are ReLU(0)=0 and
    contribute nothing downstream.  Call once; reuse across forward calls.
    """
    (w1, b1), (w2, b2), (w3, b3), (w4, b4) = params
    in_dim = w1.shape[0]
    d1 = _rup(w1.shape[1], LANE)
    d2 = _rup(w2.shape[1], LANE)
    d3 = _rup(w3.shape[1], LANE)
    d4 = _rup(w4.shape[1], LANE)
    prepped = (
        _pad2d(w1, in_dim, d1, jnp.bfloat16), _pad2d(b1, 1, d1, jnp.float32),
        _pad2d(w2, d1, d2, jnp.bfloat16),     _pad2d(b2, 1, d2, jnp.float32),
        _pad2d(w3, d2, d3, jnp.bfloat16),     _pad2d(b3, 1, d3, jnp.float32),
        _pad2d(w4, d3, d4, jnp.bfloat16),     _pad2d(b4, 1, d4, jnp.float32),
    )
    return prepped, w4.shape[1]


def mlp_forward(x_img, prepped_params, n_classes, *, tm_max=512):
    """x_img: (B, 3, 32, 32) float32 NCHW. Returns (B, n_classes) float32."""
    B = x_img.shape[0]
    in_dim = 32 * 32 * 3
    x = x_img.reshape(B, in_dim)          # same as torch .view(-1, 3072); no copy

    w1p, b1p, w2p, b2p, w3p, b3p, w4p, b4p = prepped_params
    d1, d2, d3, d4 = w1p.shape[1], w2p.shape[1], w3p.shape[1], w4p.shape[1]
    assert w1p.shape[0] == in_dim

    # Batch tile: multiple of 8 (f32 sublane).  No batch padding -- Pallas's
    # partial-block handling covers the ragged last tile (row-independent
    # compute; out-of-bounds output rows are masked on writeback).
    tm = min(tm_max, _rup(B, 8))
    # v7x: ensure >=2 grid steps when the batch allows it so the "parallel"
    # batch axis actually shards across both TensorCores.
    if B > 8 and pl.cdiv(B, tm) < 2:
        tm = max(8, _rup(pl.cdiv(B, 2), 8))
    grid = (pl.cdiv(B, tm),)

    # Batch-tiled x/out; weights & biases use constant index_maps so Pallas
    # keeps them VMEM-resident across the whole grid (no re-DMA per tile).
    def const(shape):
        return pl.BlockSpec(shape, lambda i: (0, 0))

    in_specs = [
        pl.BlockSpec((tm, in_dim), lambda i: (i, 0)),   # f32 x tile
        const((in_dim, d1)), const((1, d1)),
        const((d1, d2)), const((1, d2)),
        const((d2, d3)), const((1, d3)),
        const((d3, d4)), const((1, d4)),
    ]
    out_spec = pl.BlockSpec((tm, d4), lambda i: (i, 0))

    weight_bytes = sum(int(a.size) * a.dtype.itemsize for a in prepped_params)

    # VMEM budget: double-buffered f32 x/out tiles + resident weights + slack.
    vmem_need = (2 * tm * in_dim * 4
                 + 2 * tm * d4 * 4
                 + 2 * weight_bytes
                 + (4 << 20))
    vmem_limit = int(min(max(vmem_need, 32 << 20), 56 << 20))

    flops = 2 * B * (in_dim * d1 + d1 * d2 + d2 * d3 + d3 * d4)
    bytes_accessed = x.size * 4 + weight_bytes + B * d4 * 4

    out_padded = pl.pallas_call(
        mlp_kernel,
        out_shape=jax.ShapeDtypeStruct((B, d4), jnp.float32),
        grid=grid,
        in_specs=in_specs,
        out_specs=out_spec,
        compiler_params=pltpu.CompilerParams(
            dimension_semantics=("parallel",),
            vmem_limit_bytes=vmem_limit),
        cost_estimate=pl.CostEstimate(
            flops=flops, transcendentals=0, bytes_accessed=bytes_accessed),
    )(x, w1p, b1p, w2p, b2p, w3p, b3p, w4p, b4p)

    return out_padded[:, :n_classes]


def init_params(key, input_size, hidden_dim, n_classes):
    """Deterministic init mimicking nn.Linear's uniform(-1/sqrt(fan_in), 1/sqrt(fan_in)).
    Weights are (in_features, out_features) so the kernel computes x @ W."""
    dims = [input_size, hidden_dim * 2, hidden_dim, hidden_dim // 2, n_classes]
    params = []
    for i in range(4):
        fan_in, fan_out = dims[i], dims[i + 1]
        key, kw, kb = jax.random.split(key, 3)
        bound = 1.0 / (fan_in ** 0.5)
        w = jax.random.uniform(kw, (fan_in, fan_out), jnp.float32, -bound, bound)
        b = jax.random.uniform(kb, (1, fan_out), jnp.float32, -bound, bound)
        params.append((w, b))
    return params


def reference_forward(x_img, params):
    """Plain-JAX reference mirroring the kernel's bf16 MXU inputs / f32 accumulation."""
    B = x_img.shape[0]
    x = x_img.reshape(B, -1)
    (w1, b1), (w2, b2), (w3, b3), (w4, b4) = params

    def mm(a, w):
        return jnp.dot(a.astype(jnp.bfloat16), w.astype(jnp.bfloat16),
                       preferred_element_type=jnp.float32)

    h = jnp.maximum(mm(x, w1) + b1, 0.0)
    h = jnp.maximum(mm(h, w2) + b2, 0.0)
    h = jnp.maximum(mm(h, w3) + b3, 0.0)
    return mm(h, w4) + b4


if __name__ == "__main__":
    key = jax.random.PRNGKey(0)
    key, k_x = jax.random.split(key)

    B = 2
    input_size = 32 * 32 * 3   # forward hard-codes view(-1, 32*32*3)
    hidden_dim = 64
    n_classes = 10

    x_img = jax.random.normal(k_x, (B, 3, 32, 32), dtype=jnp.float32)
    params = init_params(key, input_size, hidden_dim, n_classes)
    # One-time weight prep hoisted out of the per-call forward path.
    prepped, n_out = prepare_params(params)
    assert n_out == n_classes

    out = mlp_forward(x_img, prepped, n_classes)
    jax.block_until_ready(out)
    assert out.shape == (B, n_classes)
    ref = reference_forward(x_img, params)
    assert jnp.allclose(out, ref, atol=1e-2, rtol=1e-2), \
        float(jnp.max(jnp.abs(out - ref)))

    # Exercise the multi-tile grid with a ragged last block (no batch padding)
    # and VMEM-resident weights.
    key, k_x2 = jax.random.split(key)
    B2 = 50
    x_img2 = jax.random.normal(k_x2, (B2, 3, 32, 32), dtype=jnp.float32)
    out2 = mlp_forward(x_img2, prepped, n_classes, tm_max=16)
    jax.block_until_ready(out2)
    assert out2.shape == (B2, n_classes)
    ref2 = reference_forward(x_img2, params)
    assert jnp.allclose(out2, ref2, atol=1e-2, rtol=1e-2), \
        float(jnp.max(jnp.abs(out2 - ref2)))

    print("KERNEL_OK")
</pallas_src>

<mosaic_0001>
module attributes {stable_mosaic.version = 11 : i64} {
  func.func @mlp_kernel(%arg0: i32, %arg1: memref<8x3072xf32, #tpu.memory_space<vmem>>, %arg2: memref<3072x128xbf16, #tpu.memory_space<vmem>>, %arg3: memref<1x128xf32, #tpu.memory_space<vmem>>, %arg4: memref<128x128xbf16, #tpu.memory_space<vmem>>, %arg5: memref<1x128xf32, #tpu.memory_space<vmem>>, %arg6: memref<128x128xbf16, #tpu.memory_space<vmem>>, %arg7: memref<1x128xf32, #tpu.memory_space<vmem>>, %arg8: memref<128x128xbf16, #tpu.memory_space<vmem>>, %arg9: memref<1x128xf32, #tpu.memory_space<vmem>>, %arg10: memref<8x128xf32, #tpu.memory_space<vmem>>) attributes {dimension_semantics = [#tpu.dimension_semantics<parallel>], iteration_bounds = array<i64: 1>, scalar_prefetch = 0 : i64, scratch_operands = 0 : i64, tpu.core_type = #tpu.core_type<tc>, window_params = [{transform_indices = @transform_0, window_bounds = array<i64: 8, 3072>}, {pipeline_mode = #tpu.pipeline_mode<synchronous>, transform_indices = @transform_1, window_bounds = array<i64: 3072, 128>}, {pipeline_mode = #tpu.pipeline_mode<synchronous>, transform_indices = @transform_2, window_bounds = array<i64: 1, 128>}, {pipeline_mode = #tpu.pipeline_mode<synchronous>, transform_indices = @transform_3, window_bounds = array<i64: 128, 128>}, {pipeline_mode = #tpu.pipeline_mode<synchronous>, transform_indices = @transform_4, window_bounds = array<i64: 1, 128>}, {pipeline_mode = #tpu.pipeline_mode<synchronous>, transform_indices = @transform_5, window_bounds = array<i64: 128, 128>}, {pipeline_mode = #tpu.pipeline_mode<synchronous>, transform_indices = @transform_6, window_bounds = array<i64: 1, 128>}, {pipeline_mode = #tpu.pipeline_mode<synchronous>, transform_indices = @transform_7, window_bounds = array<i64: 128, 128>}, {pipeline_mode = #tpu.pipeline_mode<synchronous>, transform_indices = @transform_8, window_bounds = array<i64: 1, 128>}, {transform_indices = @transform_9, window_bounds = array<i64: 8, 128>}]} {
    %c0 = arith.constant 0 : index
    %c0_0 = arith.constant 0 : index
    %0 = vector.load %arg1[%c0, %c0_0] : memref<8x3072xf32, #tpu.memory_space<vmem>>, vector<8x3072xf32>
    %1 = arith.truncf %0 : vector<8x3072xf32> to vector<8x3072xbf16>
    %c0_1 = arith.constant 0 : index
    %c0_2 = arith.constant 0 : index
    %2 = vector.load %arg2[%c0_1, %c0_2] : memref<3072x128xbf16, #tpu.memory_space<vmem>>, vector<3072x128xbf16>
    %cst = arith.constant dense<0.000000e+00> : vector<8x128xf32>
    %3 = tpu.matmul %1, %2, %cst {dimension_numbers = #tpu.dot_dimension_numbers<[1], [0], [0], [1], [0, 0, 1, 1], [], []>} : vector<8x3072xbf16>, vector<3072x128xbf16>, vector<8x128xf32> -> vector<8x128xf32>
    %c0_3 = arith.constant 0 : index
    %c0_4 = arith.constant 0 : index
    %4 = vector.load %arg3[%c0_3, %c0_4] : memref<1x128xf32, #tpu.memory_space<vmem>>, vector<1x128xf32>
    %5 = vector.broadcast %4 : vector<1x128xf32> to vector<8x128xf32>
    %6 = arith.addf %3, %5 : vector<8x128xf32>
    %cst_5 = arith.constant 0.000000e+00 : f32
    %7 = vector.broadcast %cst_5 : f32 to vector<8x128xf32>
    %8 = arith.maximumf %6, %7 : vector<8x128xf32>
    %9 = arith.truncf %8 : vector<8x128xf32> to vector<8x128xbf16>
    %c0_6 = arith.constant 0 : index
    %c0_7 = arith.constant 0 : index
    %10 = vector.load %arg4[%c0_6, %c0_7] : memref<128x128xbf16, #tpu.memory_space<vmem>>, vector<128x128xbf16>
    %cst_8 = arith.constant dense<0.000000e+00> : vector<8x128xf32>
    %11 = tpu.matmul %9, %10, %cst_8 {dimension_numbers = #tpu.dot_dimension_numbers<[1], [0], [0], [1], [0, 0, 1, 1], [], []>} : vector<8x128xbf16>, vector<128x128xbf16>, vector<8x128xf32> -> vector<8x128xf32>
    %c0_9 = arith.constant 0 : index
    %c0_10 = arith.constant 0 : index
    %12 = vector.load %arg5[%c0_9, %c0_10] : memref<1x128xf32, #tpu.memory_space<vmem>>, vector<1x128xf32>
    %13 = vector.broadcast %12 : vector<1x128xf32> to vector<8x128xf32>
    %14 = arith.addf %11, %13 : vector<8x128xf32>
    %cst_11 = arith.constant 0.000000e+00 : f32
    %15 = vector.broadcast %cst_11 : f32 to vector<8x128xf32>
    %16 = arith.maximumf %14, %15 : vector<8x128xf32>
    %17 = arith.truncf %16 : vector<8x128xf32> to vector<8x128xbf16>
    %c0_12 = arith.constant 0 : index
    %c0_13 = arith.constant 0 : index
    %18 = vector.load %arg6[%c0_12, %c0_13] : memref<128x128xbf16, #tpu.memory_space<vmem>>, vector<128x128xbf16>
    %cst_14 = arith.constant dense<0.000000e+00> : vector<8x128xf32>
    %19 = tpu.matmul %17, %18, %cst_14 {dimension_numbers = #tpu.dot_dimension_numbers<[1], [0], [0], [1], [0, 0, 1, 1], [], []>} : vector<8x128xbf16>, vector<128x128xbf16>, vector<8x128xf32> -> vector<8x128xf32>
    %c0_15 = arith.constant 0 : index
    %c0_16 = arith.constant 0 : index
    %20 = vector.load %arg7[%c0_15, %c0_16] : memref<1x128xf32, #tpu.memory_space<vmem>>, vector<1x128xf32>
    %21 = vector.broadcast %20 : vector<1x128xf32> to vector<8x128xf32>
    %22 = arith.addf %19, %21 : vector<8x128xf32>
    %cst_17 = arith.constant 0.000000e+00 : f32
    %23 = vector.broadcast %cst_17 : f32 to vector<8x128xf32>
    %24 = arith.maximumf %22, %23 : vector<8x128xf32>
    %25 = arith.truncf %24 : vector<8x128xf32> to vector<8x128xbf16>
    %c0_18 = arith.constant 0 : index
    %c0_19 = arith.constant 0 : index
    %26 = vector.load %arg8[%c0_18, %c0_19] : memref<128x128xbf16, #tpu.memory_space<vmem>>, vector<128x128xbf16>
    %cst_20 = arith.constant dense<0.000000e+00> : vector<8x128xf32>
    %27 = tpu.matmul %25, %26, %cst_20 {dimension_numbers = #tpu.dot_dimension_numbers<[1], [0], [0], [1], [0, 0, 1, 1], [], []>} : vector<8x128xbf16>, vector<128x128xbf16>, vector<8x128xf32> -> vector<8x128xf32>
    %c0_21 = arith.constant 0 : index
    %c0_22 = arith.constant 0 : index
    %28 = vector.load %arg9[%c0_21, %c0_22] : memref<1x128xf32, #tpu.memory_space<vmem>>, vector<1x128xf32>
    %29 = vector.broadcast %28 : vector<1x128xf32> to vector<8x128xf32>
    %30 = arith.addf %27, %29 : vector<8x128xf32>
    %c0_23 = arith.constant 0 : index
    %c0_24 = arith.constant 0 : index
    %31 = vector.load %arg10[%c0_23, %c0_24] : memref<8x128xf32, #tpu.memory_space<vmem>>, vector<8x128xf32>
    tpu.vector_store %arg10[%c0_23, %c0_24], %30 {strides = array<i32>} : memref<8x128xf32, #tpu.memory_space<vmem>>, vector<8x128xf32>,
    return
  }
  func.func @transform_0(%arg0: i32) -> (i32, i32) {
    %c0_i32 = arith.constant 0 : i32
    %c0_i32_0 = arith.constant 0 : i32
    return %arg0, %c0_i32 : i32, i32
  }
  func.func @transform_1(%arg0: i32) -> (i32, i32) {
    %c0_i32 = arith.constant 0 : i32
    %c0_i32_0 = arith.constant 0 : i32
    %c0_i32_1 = arith.constant 0 : i32
    return %c0_i32, %c0_i32_0 : i32, i32
  }
  func.func @transform_2(%arg0: i32) -> (i32, i32) {
    %c0_i32 = arith.constant 0 : i32
    %c0_i32_0 = arith.constant 0 : i32
    %c0_i32_1 = arith.constant 0 : i32
    return %c0_i32, %c0_i32_0 : i32, i32
  }
  func.func @transform_3(%arg0: i32) -> (i32, i32) {
    %c0_i32 = arith.constant 0 : i32
    %c0_i32_0 = arith.constant 0 : i32
    %c0_i32_1 = arith.constant 0 : i32
    return %c0_i32, %c0_i32_0 : i32, i32
  }
  func.func @transform_4(%arg0: i32) -> (i32, i32) {
    %c0_i32 = arith.constant 0 : i32
    %c0_i32_0 = arith.constant 0 : i32
    %c0_i32_1 = arith.constant 0 : i32
    return %c0_i32, %c0_i32_0 : i32, i32
  }
  func.func @transform_5(%arg0: i32) -> (i32, i32) {
    %c0_i32 = arith.constant 0 : i32
    %c0_i32_0 = arith.constant 0 : i32
    %c0_i32_1 = arith.constant 0 : i32
    return %c0_i32, %c0_i32_0 : i32, i32
  }
  func.func @transform_6(%arg0: i32) -> (i32, i32) {
    %c0_i32 = arith.constant 0 : i32
    %c0_i32_0 = arith.constant 0 : i32
    %c0_i32_1 = arith.constant 0 : i32
    return %c0_i32, %c0_i32_0 : i32, i32
  }
  func.func @transform_7(%arg0: i32) -> (i32, i32) {
    %c0_i32 = arith.constant 0 : i32
    %c0_i32_0 = arith.constant 0 : i32
    %c0_i32_1 = arith.constant 0 : i32
    return %c0_i32, %c0_i32_0 : i32, i32
  }
  func.func @transform_8(%arg0: i32) -> (i32, i32) {
    %c0_i32 = arith.constant 0 : i32
    %c0_i32_0 = arith.constant 0 : i32
    %c0_i32_1 = arith.constant 0 : i32
    return %c0_i32, %c0_i32_0 : i32, i32
  }
  func.func @transform_9(%arg0: i32) -> (i32, i32) {
    %c0_i32 = arith.constant 0 : i32
    %c0_i32_0 = arith.constant 0 : i32
    return %arg0, %c0_i32 : i32, i32
  }
}

</mosaic_0001>

<bundles_post_ra>
// kernel: tpu_custom_call.1
= control target key start
LH: loop header
LB: loop body
LE: loop exit
PB: predicated region body
PF: predicated region fallthrough
CT: control target
= control target key end

     0   :  { %14 = vsyncpa [#allocation3], 0  ;;  %s3737_s0 = inlined_call_operand.hbm [shape: f32[2,3072], index: 0, kind: input, shape index: {}]   ;;  %s3738_s1 = inlined_call_operand.hbm [shape: bf16[3072,128], index: 1, kind: input, shape index: {}]   ;;  %s3739_s2 = inlined_call_operand.vmem [shape: f32[1,128], index: 2, kind: input, shape index: {}]   ;;  %s3740_s3 = inlined_call_operand.hbm [shape: bf16[128,128], index: 3, kind: input, shape index: {}]   ;;  %s3741_s4 = inlined_call_operand.vmem [shape: f32[1,128], index: 4, kind: input, shape index: {}]   ;;  %s3742_s5 = inlined_call_operand.hbm [shape: bf16[128,128], index: 5, kind: input, shape index: {}]   ;;  %s3743_s6 = inlined_call_operand.vmem [shape: f32[1,128], index: 6, kind: input, shape index: {}]   ;;  %s3744_s7 = inlined_call_operand.hbm [shape: bf16[128,128], index: 7, kind: input, shape index: {}]   ;;  %s3745_s8 = inlined_call_operand.vmem [shape: f32[1,128], index: 8, kind: input, shape index: {}]   ;;  %s3746_s9 = inlined_call_operand.hbm [shape: f32[2,128], index: 9, kind: output, shape index: {}]  }
   0x1   :  { %15 = vsyncpa [#allocation6], 0 }
   0x2   :  { %16 = vsyncpa [#allocation9], 0 }
   0x3   :  { %17 = vsyncpa [#allocation4], 0  ;;  %s35_s11 = sshll.u32 %s3738_s1, 4  ;;  %s36_s11 = int_to_ptr.hbm [resolvable:$true] %s35_s11 }
   0x4   :  { %21 = vsyncadd [#allocation3], 2304  ;;  %s3633_s12 = smov [#allocation5]   ;;  %s65_s16 = sshll.u32 %s3742_s5, 4  ;;  %s66_s16 = int_to_ptr.hbm [resolvable:$true] %s65_s16 }
   0x5   :  { %s37_s13 = sshll.u32 %s3633_s12, 4  ;;  %s3634_s17 = smov 64   ;;  %s38_s13 = int_to_ptr.vmem [resolvable:$true] %s37_s13 }
   0x6   :  { %s3635_s18 = smov 4   ;;  %s3636_s19 = smov [#allocation8]  }
   0x7   :  { %43 = dma.hbm_to_vmem [thread:$0]  %s36_s11, 24576, %s38_s13, [#allocation6], %s3634_s17, %s3634_s17, %s3635_s18  }
   0x8   :  { %s67_s20 = sshll.u32 %s3636_s19, 4  ;;  %s22_s22 = sshll.u32 %s3737_s0, 4  ;;  %s68_s20 = int_to_ptr.vmem [resolvable:$true] %s67_s20  ;;  %s23_s22 = int_to_ptr.hbm [resolvable:$true] %s22_s22 }
   0x9   :  { %73 = dma.hbm_to_vmem [thread:$0]  %s66_s16, 1024, %s68_s20, [#allocation9], %s3634_s17, %s3634_s17, %s3635_s18  }
   0xa   :  { %s3637_s5 = smov [#allocation2]   ;;  %s50_s26 = sshll.u32 %s3740_s3, 4  ;;  %s51_s26 = int_to_ptr.hbm [resolvable:$true] %s50_s26 }
   0xb   :  { %s24_s23 = sshll.u32 %s3637_s5, 4  ;;  %s3638_s27 = smov 768   ;;  %s25_s23 = int_to_ptr.vmem [resolvable:$true] %s24_s23 }
   0xc   :  { %s3639_s28 = smov 48   ;;  %s3640_s29 = smov [#allocation7]  }
   0xd   :  { %30 = dma.hbm_to_vmem [thread:$0]  %s23_s22, 768, %s25_s23, [#allocation3], %s3638_s27, %s3638_s27, %s3639_s28  }
   0xe   :  { %s52_s30 = sshll.u32 %s3640_s29, 4  ;;  %s80_s11 = sshll.u32 %s3744_s7, 4  ;;  %s53_s30 = int_to_ptr.vmem [resolvable:$true] %s52_s30  ;;  %s81_s11 = int_to_ptr.hbm [resolvable:$true] %s80_s11 }
   0xf   :  { %58 = dma.hbm_to_vmem [thread:$0]  %s51_s26, 1024, %s53_s30, [#allocation6], %s3634_s17, %s3634_s17, %s3635_s18  }
  0x10   :  { %s3641_s12 = smov [#allocation10]  }
  0x11   :  { %s82_s13 = sshll.u32 %s3641_s12, 4  ;;  %s83_s13 = int_to_ptr.vmem [resolvable:$true] %s82_s13 }
  0x12   :  { %88 = dma.hbm_to_vmem [thread:$0]  %s81_s11, 1024, %s83_s13, [#allocation9], %s3634_s17, %s3634_s17, %s3635_s18  }
  0x13   :  { %3625 = dma.done.wait [#allocation3], 3072  }
  0x14   :  { %3626 = vsyncadd [#allocation3], 4294964224 }
  0x15   :  { %3627 = dma.done.wait [#allocation6], 25600  }
  0x16   :  { %3628 = vsyncadd [#allocation6], 4294941696 }
  0x17   :  { %3629 = dma.done.wait [#allocation9], 2048  }
  0x18   :  { %3630 = vsyncadd [#allocation9], 4294965248  ;;  %v3256_v0 = vld [vmem:[#allocation5 + $0x38] sm:$0xff]  ;;  %v3255_v4 = vld [vmem:[#allocation5 + $0x30] sm:$0xff] }
  0x19   :  { %v3264_v1 = vld [vmem:[#allocation5 + $0x78] sm:$0xff]  ;;  %1802 = vmatpush.bf16.msra.mxu0 %v3256_v0  ;;  %v3263_v5 = vld [vmem:[#allocation5 + $0x70] sm:$0xff]  ;;  %v3254_v8 = vld [vmem:[#allocation5 + $0x28] sm:$0xff] }
  0x1a   :  { %v3272_v2 = vld [vmem:[#allocation5 + $0xb8] sm:$0xff]  ;;  %1815 = vmatpush.bf16.msra.mxu1 %v3264_v1  ;;  %v3271_v6 = vld [vmem:[#allocation5 + $0xb0] sm:$0xff]  ;;  %v3262_v9 = vld [vmem:[#allocation5 + $0x68] sm:$0xff] }
  0x1b   :  { %v3280_v3 = vld [vmem:[#allocation5 + $0xf8] sm:$0xff]  ;;  %1828 = vmatpush.bf16.msra.mxu2 %v3272_v2  ;;  %v3279_v7 = vld [vmem:[#allocation5 + $0xf0] sm:$0xff]  ;;  %v3270_v10 = vld [vmem:[#allocation5 + $0xa8] sm:$0xff] }
  0x1c   :  { %1841 = vmatpush.bf16.msra.mxu3 %v3280_v3  ;;  %v3278_v11 = vld [vmem:[#allocation5 + $0xe8] sm:$0xff]  ;;  %v3253_v12 = vld [vmem:[#allocation5 + $0x20] sm:$0xff]  ;;  %v3252_v16 = vld [vmem:[#allocation5 + $0x18] sm:$0xff] }
  0x1d   :  { %1803 = vmatpush.bf16.msra.mxu0 %v3255_v4  ;;  %v3261_v13 = vld [vmem:[#allocation5 + $0x60] sm:$0xff]  ;;  %v3260_v17 = vld [vmem:[#allocation5 + $0x58] sm:$0xff]  ;;  %v3251_v20 = vld [vmem:[#allocation5 + $0x10] sm:$0xff] }
  0x1e   :  { %1816 = vmatpush.bf16.msra.mxu1 %v3263_v5  ;;  %v3269_v14 = vld [vmem:[#allocation5 + $0xa0] sm:$0xff]  ;;  %v3268_v18 = vld [vmem:[#allocation5 + $0x98] sm:$0xff]  ;;  %v3259_v21 = vld [vmem:[#allocation5 + $0x50] sm:$0xff] }
  0x1f   :  { %1829 = vmatpush.bf16.msra.mxu2 %v3271_v6  ;;  %v3277_v15 = vld [vmem:[#allocation5 + $0xe0] sm:$0xff]  ;;  %v3276_v19 = vld [vmem:[#allocation5 + $0xd8] sm:$0xff]  ;;  %v117_v23 = vld [vmem:[#allocation2 + $0x30] sm:$0xff] }
  0x20   :  { %1842 = vmatpush.bf16.msra.mxu3 %v3279_v7  ;;  %v111_v22 = vld [vmem:[#allocation2] sm:$0xff]  ;;  %v129_v25 = vld [vmem:[#allocation2 + $0x90] sm:$0xff]  ;;  %161 = vst [vmem:[#allocation1 + $0x1] ss:$4 sm:$0xff] %v117_v23  ;;  %v3250_v28 = vld [vmem:[#allocation5 + $0x8] sm:$0xff] }
  0x21   :  { %1804 = vmatpush.bf16.msra.mxu0 %v3254_v8  ;;  %v123_v24 = vld [vmem:[#allocation2 + $0x60] sm:$0xff]  ;;  %159 = vst [vmem:[#allocation1] ss:$4 sm:$0xff] %v111_v22  ;;  %v3267_v26 = vld [vmem:[#allocation5 + $0x90] sm:$0xff]  ;;  %v3258_v29 = vld [vmem:[#allocation5 + $0x48] sm:$0xff] }
  0x22   :  { %1817 = vmatpush.bf16.msra.mxu1 %v3262_v9  ;;  %v3275_v27 = vld [vmem:[#allocation5 + $0xd0] sm:$0xff]  ;;  %163 = vst [vmem:[#allocation1 + $0x2] ss:$4 sm:$0xff] %v123_v24  ;;  %v3266_v30 = vld [vmem:[#allocation5 + $0x88] sm:$0xff]  ;;  %v3249_v32 = vld [vmem:[#allocation5] sm:$0xff] }
  0x23   :  { %1830 = vmatpush.bf16.msra.mxu2 %v3270_v10  ;;  %165 = vst [vmem:[#allocation1 + $0x3] ss:$4 sm:$0xff] %v129_v25  ;;  %v3274_v31 = vld [vmem:[#allocation5 + $0xc8] sm:$0xff]  ;;  %v3257_v33 = vld [vmem:[#allocation5 + $0x40] sm:$0xff]  ;;  %v3288_v36 = vld [vmem:[#allocation5 + $0x138] sm:$0xff] }
  0x24   :  { %1843 = vmatpush.bf16.msra.mxu3 %v3278_v11  ;;  %v3265_v34 = vld [vmem:[#allocation5 + $0x80] sm:$0xff]  ;;  %v3296_v37 = vld [vmem:[#allocation5 + $0x178] sm:$0xff]  ;;  %v113_v40 = vld [vmem:[#allocation2 + $0x10] sm:$0xff] }
  0x25   :  { %1805 = vmatpush.bf16.msra.mxu0 %v3253_v12  ;;  %v3273_v35 = vld [vmem:[#allocation5 + $0xc0] sm:$0xff]  ;;  %v3304_v38 = vld [vmem:[#allocation5 + $0x1b8] sm:$0xff]  ;;  %v125_v42 = vld [vmem:[#allocation2 + $0x70] sm:$0xff] }
  0x26   :  { %1818 = vmatpush.bf16.msra.mxu1 %v3261_v13  ;;  %v3312_v39 = vld [vmem:[#allocation5 + $0x1f8] sm:$0xff]  ;;  %v119_v41 = vld [vmem:[#allocation2 + $0x40] sm:$0xff]  ;;  %v112_v52 = vld [vmem:[#allocation2 + $0x8] sm:$0xff] }
  0x27   :  { %1831 = vmatpush.bf16.msra.mxu2 %v3269_v14  ;;  %v131_v49 = vld [vmem:[#allocation2 + $0xa0] sm:$0xff]  ;;  %v3287_v53 = vld [vmem:[#allocation5 + $0x130] sm:$0xff]  ;;  %v118_v55 = vld [vmem:[#allocation2 + $0x38] sm:$0xff]  ;;  %167 = vst [vmem:[#allocation1 + $0x20] ss:$4 sm:$0xff] %v112_v52 }
  0x28   :  { %1844 = vmatpush.bf16.msra.mxu3 %v3277_v15  ;;  %v3295_v54 = vld [vmem:[#allocation5 + $0x170] sm:$0xff]  ;;  %v124_v58 = vld [vmem:[#allocation2 + $0x68] sm:$0xff]  ;;  %v130_v59 = vld [vmem:[#allocation2 + $0x98] sm:$0xff]  ;;  %169 = vst [vmem:[#allocation1 + $0x21] ss:$4 sm:$0xff] %v118_v55 }
  0x29   :  { %1806 = vmatpush.bf16.msra.mxu0 %v3252_v16  ;;  %v3303_v56 = vld [vmem:[#allocation5 + $0x1b0] sm:$0xff]  ;;  %v3286_v60 = vld [vmem:[#allocation5 + $0x128] sm:$0xff]  ;;  %171 = vst [vmem:[#allocation1 + $0x22] ss:$4 sm:$0xff] %v124_v58  ;;  %v3285_v0 = vld [vmem:[#allocation5 + $0x120] sm:$0xff] }
  0x2a   :  { %1819 = vmatpush.bf16.msra.mxu1 %v3260_v17  ;;  %v176_v43 = vld.sshfl [vmem:[#allocation1 + $0x10] sm:$0xff pattern:$0x73625140]  ;;  %v174_v44 = vld.sshfl [vmem:[#allocation1] sm:$0xff pattern:$0x73625140] }
  0x2b   :  { %1832 = vmatpush.bf16.msra.mxu2 %v3268_v18  ;;  %v177_v45 = vld.sshfl [vmem:[#allocation1 + $0x18] sm:$0xff pattern:$0x73625140]  ;;  %v175_v46 = vld.sshfl [vmem:[#allocation1 + $0x8] sm:$0xff pattern:$0x73625140]  ;;  %v240_v47 = vpack.c.bf16 %v176_v43, %v176_v43  ;;  %v238_v48 = vpack.c.bf16 %v174_v44, %v174_v44 }
  0x2c   :  { %1845 = vmatpush.bf16.msra.mxu3 %v3276_v19  ;;  %182 = vst [vmem:[#allocation1] ss:$4 sm:$0xff] %v113_v40  ;;  %v241_v50 = vpack.c.bf16 %v177_v45, %v177_v45  ;;  %v239_v51 = vpack.c.bf16 %v175_v46, %v175_v46  ;;  %v3311_v57 = vld [vmem:[#allocation5 + $0x1f0] sm:$0xff]  ;;  %v3294_v61 = vld [vmem:[#allocation5 + $0x168] sm:$0xff]  ;;  %v3293_v1 = vld [vmem:[#allocation5 + $0x160] sm:$0xff] }
  0x2d   :  { %1807 = vmatpush.bf16.msra.mxu0 %v3251_v20  ;;  %183 = vst [vmem:[#allocation1 + $0x1] ss:$4 sm:$0xff] %v119_v41  ;;  %v3302_v62 = vld [vmem:[#allocation5 + $0x1a8] sm:$0xff]  ;;  %v3301_v2 = vld [vmem:[#allocation5 + $0x1a0] sm:$0xff]  ;;  %v3284_v4 = vld [vmem:[#allocation5 + $0x118] sm:$0xff] }
  0x2e   :  { %1820 = vmatpush.bf16.msra.mxu1 %v3259_v21  ;;  %184 = vst [vmem:[#allocation1 + $0x2] ss:$4 sm:$0xff] %v125_v42  ;;  %v3310_v63 = vld [vmem:[#allocation5 + $0x1e8] sm:$0xff]  ;;  %v3309_v3 = vld [vmem:[#allocation5 + $0x1e0] sm:$0xff]  ;;  %v3292_v5 = vld [vmem:[#allocation5 + $0x158] sm:$0xff] }
  0x2f   :  { %1833 = vmatpush.bf16.msra.mxu2 %v3267_v26  ;;  %185 = vst [vmem:[#allocation1 + $0x3] ss:$4 sm:$0xff] %v131_v49  ;;  %v3300_v6 = vld [vmem:[#allocation5 + $0x198] sm:$0xff]  ;;  %v120_v9 = vld [vmem:[#allocation2 + $0x48] sm:$0xff]  ;;  %v3283_v16 = vld [vmem:[#allocation5 + $0x110] sm:$0xff] }
  0x30   :  { %1846 = vmatpush.bf16.msra.mxu3 %v3275_v27  ;;  %173 = vst [vmem:[#allocation1 + $0x23] ss:$4 sm:$0xff] %v130_v59  ;;  %v3308_v7 = vld [vmem:[#allocation5 + $0x1d8] sm:$0xff]  ;;  %v132_v15 = vld [vmem:[#allocation2 + $0xa8] sm:$0xff]  ;;  %v3291_v17 = vld [vmem:[#allocation5 + $0x150] sm:$0xff] }
  0x31   :  { %1808 = vmatpush.bf16.msra.mxu0 %v3250_v28  ;;  %v114_v8 = vld [vmem:[#allocation2 + $0x18] sm:$0xff]  ;;  %v3299_v18 = vld [vmem:[#allocation5 + $0x190] sm:$0xff]  ;;  %v3282_v20 = vld [vmem:[#allocation5 + $0x108] sm:$0xff] }
  0x32   :  { %1821 = vmatpush.bf16.msra.mxu1 %v3258_v29  ;;  %v126_v10 = vld [vmem:[#allocation2 + $0x78] sm:$0xff]  ;;  %v3307_v19 = vld [vmem:[#allocation5 + $0x1d0] sm:$0xff]  ;;  %v3290_v21 = vld [vmem:[#allocation5 + $0x148] sm:$0xff] }
  0x33   :  { %1834 = vmatpush.bf16.msra.mxu2 %v3266_v30  ;;  %v3298_v22 = vld [vmem:[#allocation5 + $0x188] sm:$0xff]  ;;  %v3281_v24 = vld [vmem:[#allocation5 + $0x100] sm:$0xff]  ;;  %v3320_v28 = vld [vmem:[#allocation5 + $0x238] sm:$0xff] }
  0x34   :  { %1847 = vmatpush.bf16.msra.mxu3 %v3274_v31  ;;  %v3306_v23 = vld [vmem:[#allocation5 + $0x1c8] sm:$0xff]  ;;  %v3289_v25 = vld [vmem:[#allocation5 + $0x140] sm:$0xff]  ;;  %v3328_v29 = vld [vmem:[#allocation5 + $0x278] sm:$0xff] }
  0x35   :  { %1809 = vmatpush.bf16.msra.mxu0 %v3249_v32  ;;  %v3297_v26 = vld [vmem:[#allocation5 + $0x180] sm:$0xff]  ;;  %v3336_v30 = vld [vmem:[#allocation5 + $0x2b8] sm:$0xff]  ;;  %v3318_v40 = vld [vmem:[#allocation5 + $0x228] sm:$0xff] }
  0x36   :  { %1822 = vmatpush.bf16.msra.mxu1 %v3257_v33  ;;  %v3305_v27 = vld [vmem:[#allocation5 + $0x1c0] sm:$0xff]  ;;  %v3344_v31 = vld [vmem:[#allocation5 + $0x2f8] sm:$0xff]  ;;  %v3326_v41 = vld [vmem:[#allocation5 + $0x268] sm:$0xff] }
  0x37   :  { %1835 = vmatpush.bf16.msra.mxu2 %v3265_v34  ;;  %v180_v11 = vld.sshfl [vmem:[#allocation1 + $0x30] sm:$0xff pattern:$0x73625140]  ;;  %v178_v12 = vld.sshfl [vmem:[#allocation1 + $0x20] sm:$0xff pattern:$0x73625140] }
  0x38   :  { %1848 = vmatpush.bf16.msra.mxu3 %v3273_v35  ;;  %1810 = vmatmul.bf16.vlgmr.msra.gmra.mxu0 %v238_v48  ;;  %v181_v13 = vld.sshfl [vmem:[#allocation1 + $0x38] sm:$0xff pattern:$0x73625140]  ;;  %v179_v14 = vld.sshfl [vmem:[#allocation1 + $0x28] sm:$0xff pattern:$0x73625140]  ;;  %v244_v32 = vpack.c.bf16 %v180_v11, %v180_v11  ;;  %v242_v33 = vpack.c.bf16 %v178_v12, %v178_v12 }
  0x39   :  { %1854 = vmatpush.bf16.msrb.mxu0 %v3288_v36  ;;  %1823 = vmatmul.bf16.vlgmr.msra.gmra.mxu1 %v239_v51  ;;  %186 = vst [vmem:[#allocation1 + $0x20] ss:$4 sm:$0xff] %v114_v8  ;;  %v245_v34 = vpack.c.bf16 %v181_v13, %v181_v13  ;;  %v243_v35 = vpack.c.bf16 %v179_v14, %v179_v14  ;;  %v3319_v36 = vld [vmem:[#allocation5 + $0x230] sm:$0xff]  ;;  %v3334_v42 = vld [vmem:[#allocation5 + $0x2a8] sm:$0xff]  ;;  %v3317_v44 = vld [vmem:[#allocation5 + $0x220] sm:$0xff] }
  0x3a   :  { %1867 = vmatpush.bf16.msrb.mxu1 %v3296_v37  ;;  %1836 = vmatmul.bf16.vlgmr.msra.gmra.mxu2 %v240_v47  ;;  %187 = vst [vmem:[#allocation1 + $0x21] ss:$4 sm:$0xff] %v120_v9  ;;  %v3327_v37 = vld [vmem:[#allocation5 + $0x270] sm:$0xff]  ;;  %v3342_v43 = vld [vmem:[#allocation5 + $0x2e8] sm:$0xff]  ;;  %v3325_v45 = vld [vmem:[#allocation5 + $0x260] sm:$0xff] }
  0x3b   :  { %1880 = vmatpush.bf16.msrb.mxu2 %v3304_v38  ;;  %1849 = vmatmul.bf16.vlgmr.msra.gmra.mxu3 %v241_v50  ;;  %188 = vst [vmem:[#allocation1 + $0x22] ss:$4 sm:$0xff] %v126_v10  ;;  %v3335_v38 = vld [vmem:[#allocation5 + $0x2b0] sm:$0xff]  ;;  %v3333_v46 = vld [vmem:[#allocation5 + $0x2a0] sm:$0xff]  ;;  %v3316_v48 = vld [vmem:[#allocation5 + $0x218] sm:$0xff] }
  0x3c   :  { %1893 = vmatpush.bf16.msrb.mxu3 %v3312_v39  ;;  %189 = vst [vmem:[#allocation1 + $0x23] ss:$4 sm:$0xff] %v132_v15  ;;  %v3343_v39 = vld [vmem:[#allocation5 + $0x2f0] sm:$0xff]  ;;  %v3341_v47 = vld [vmem:[#allocation5 + $0x2e0] sm:$0xff]  ;;  %v3324_v49 = vld [vmem:[#allocation5 + $0x258] sm:$0xff] }
  0x3d   :  { %1855 = vmatpush.bf16.msrb.mxu0 %v3287_v53  ;;  %v3332_v50 = vld [vmem:[#allocation5 + $0x298] sm:$0xff]  ;;  %v3315_v52 = vld [vmem:[#allocation5 + $0x210] sm:$0xff]  ;;  %v3330_v58 = vld [vmem:[#allocation5 + $0x288] sm:$0xff] }
  0x3e   :  { %1868 = vmatpush.bf16.msrb.mxu1 %v3295_v54  ;;  %v3340_v51 = vld [vmem:[#allocation5 + $0x2d8] sm:$0xff]  ;;  %v3323_v53 = vld [vmem:[#allocation5 + $0x250] sm:$0xff]  ;;  %v3338_v59 = vld [vmem:[#allocation5 + $0x2c8] sm:$0xff] }
  0x3f   :  { %1881 = vmatpush.bf16.msrb.mxu2 %v3303_v56  ;;  %v3331_v54 = vld [vmem:[#allocation5 + $0x290] sm:$0xff]  ;;  %v3314_v56 = vld [vmem:[#allocation5 + $0x208] sm:$0xff] }
  0x40   :  { %1894 = vmatpush.bf16.msrb.mxu3 %v3311_v57  ;;  %v3339_v55 = vld [vmem:[#allocation5 + $0x2d0] sm:$0xff]  ;;  %v3322_v57 = vld [vmem:[#allocation5 + $0x248] sm:$0xff] }
  0x41   :  { %1856 = vmatpush.bf16.msrb.mxu0 %v3286_v60  ;;  %v3313_v60 = vld [vmem:[#allocation5 + $0x200] sm:$0xff]  ;;  %v3351_v12 = vld [vmem:[#allocation5 + $0x330] sm:$0xff] }
  0x42   :  { %1869 = vmatpush.bf16.msrb.mxu1 %v3294_v61  ;;  %v3321_v61 = vld [vmem:[#allocation5 + $0x240] sm:$0xff]  ;;  %v3359_v13 = vld [vmem:[#allocation5 + $0x370] sm:$0xff] }
  0x43   :  { %1882 = vmatpush.bf16.msrb.mxu2 %v3302_v62  ;;  %v3329_v62 = vld [vmem:[#allocation5 + $0x280] sm:$0xff]  ;;  %v3367_v14 = vld [vmem:[#allocation5 + $0x3b0] sm:$0xff] }
  0x44   :  { %1895 = vmatpush.bf16.msrb.mxu3 %v3310_v63  ;;  %v3337_v63 = vld [vmem:[#allocation5 + $0x2c0] sm:$0xff]  ;;  %v3375_v15 = vld [vmem:[#allocation5 + $0x3f0] sm:$0xff] }
  0x45   :  { %1857 = vmatpush.bf16.msrb.mxu0 %v3285_v0  ;;  %v3352_v0 = vld [vmem:[#allocation5 + $0x338] sm:$0xff] }
  0x46   :  { %1870 = vmatpush.bf16.msrb.mxu1 %v3293_v1  ;;  %v3360_v1 = vld [vmem:[#allocation5 + $0x378] sm:$0xff] }
  0x47   :  { %1883 = vmatpush.bf16.msrb.mxu2 %v3301_v2  ;;  %v190_v2 = vld.sshfl [vmem:[#allocation1] sm:$0xff pattern:$0x73625140] }
  0x48   :  { %1896 = vmatpush.bf16.msrb.mxu3 %v3309_v3  ;;  %v192_v3 = vld.sshfl [vmem:[#allocation1 + $0x10] sm:$0xff pattern:$0x73625140]  ;;  %v246_v8 = vpack.c.bf16 %v190_v2, %v190_v2  ;;  %v3397_v2 = vld [vmem:[#allocation5 + $0x4a0] sm:$0xff] }
  0x49   :  { %1858 = vmatpush.bf16.msrb.mxu0 %v3284_v4  ;;  %v191_v4 = vld.sshfl [vmem:[#allocation1 + $0x8] sm:$0xff pattern:$0x73625140]  ;;  %v248_v9 = vpack.c.bf16 %v192_v3, %v192_v3 }
  0x4a   :  { %1871 = vmatpush.bf16.msrb.mxu1 %v3292_v5  ;;  %v193_v5 = vld.sshfl [vmem:[#allocation1 + $0x18] sm:$0xff pattern:$0x73625140]  ;;  %v247_v10 = vpack.c.bf16 %v191_v4, %v191_v4  ;;  %v3405_v3 = vld [vmem:[#allocation5 + $0x4e0] sm:$0xff]  ;;  %v3380_v4 = vld [vmem:[#allocation5 + $0x418] sm:$0xff] }
  0x4b   :  { %1884 = vmatpush.bf16.msrb.mxu2 %v3300_v6  ;;  %v3368_v6 = vld [vmem:[#allocation5 + $0x3b8] sm:$0xff]  ;;  %v249_v11 = vpack.c.bf16 %v193_v5, %v193_v5 }
  0x4c   :  { %1897 = vmatpush.bf16.msrb.mxu3 %v3308_v7  ;;  %v3376_v7 = vld [vmem:[#allocation5 + $0x3f8] sm:$0xff] }
  0x4d   :  { %1859 = vmatpush.bf16.msrb.mxu0 %v3283_v16  ;;  %v3350_v16 = vld [vmem:[#allocation5 + $0x328] sm:$0xff]  ;;  %v3388_v5 = vld [vmem:[#allocation5 + $0x458] sm:$0xff] }
  0x4e   :  { %1872 = vmatpush.bf16.msrb.mxu1 %v3291_v17  ;;  %v3358_v17 = vld [vmem:[#allocation5 + $0x368] sm:$0xff] }
  0x4f   :  { %1885 = vmatpush.bf16.msrb.mxu2 %v3299_v18  ;;  %v3366_v18 = vld [vmem:[#allocation5 + $0x3a8] sm:$0xff] }
  0x50   :  { %1898 = vmatpush.bf16.msrb.mxu3 %v3307_v19  ;;  %v3374_v19 = vld [vmem:[#allocation5 + $0x3e8] sm:$0xff] }
  0x51   :  { %1860 = vmatpush.bf16.msrb.mxu0 %v3282_v20  ;;  %v3349_v20 = vld [vmem:[#allocation5 + $0x320] sm:$0xff] }
  0x52   :  { %1873 = vmatpush.bf16.msrb.mxu1 %v3290_v21  ;;  %v3357_v21 = vld [vmem:[#allocation5 + $0x360] sm:$0xff] }
  0x53   :  { %1886 = vmatpush.bf16.msrb.mxu2 %v3298_v22  ;;  %v3365_v22 = vld [vmem:[#allocation5 + $0x3a0] sm:$0xff] }
  0x54   :  { %1899 = vmatpush.bf16.msrb.mxu3 %v3306_v23  ;;  %v3373_v23 = vld [vmem:[#allocation5 + $0x3e0] sm:$0xff] }
  0x55   :  { %1861 = vmatpush.bf16.msrb.mxu0 %v3281_v24  ;;  %v3348_v24 = vld [vmem:[#allocation5 + $0x318] sm:$0xff] }
  0x56   :  { %1874 = vmatpush.bf16.msrb.mxu1 %v3289_v25  ;;  %v3356_v25 = vld [vmem:[#allocation5 + $0x358] sm:$0xff] }
  0x57   :  { %1887 = vmatpush.bf16.msrb.mxu2 %v3297_v26  ;;  %v3364_v26 = vld [vmem:[#allocation5 + $0x398] sm:$0xff] }
  0x58   :  { %1900 = vmatpush.bf16.msrb.mxu3 %v3305_v27  ;;  %1862 = vmatmul.bf16.vlgmr.msrb.gmra.mxu0 %v242_v33  ;;  %v3372_v27 = vld [vmem:[#allocation5 + $0x3d8] sm:$0xff]  ;;  %v3354_v33 = vld [vmem:[#allocation5 + $0x348] sm:$0xff] }
  0x59   :  { %1906 = vmatpush.bf16.msra.mxu0 %v3320_v28  ;;  %1875 = vmatmul.bf16.vlgmr.msrb.gmra.mxu1 %v243_v35  ;;  %v3347_v28 = vld [vmem:[#allocation5 + $0x310] sm:$0xff] }
  0x5a   :  { %1919 = vmatpush.bf16.msra.mxu1 %v3328_v29  ;;  %1888 = vmatmul.bf16.vlgmr.msrb.gmra.mxu2 %v244_v32  ;;  %v3355_v29 = vld [vmem:[#allocation5 + $0x350] sm:$0xff]  ;;  %v3346_v32 = vld [vmem:[#allocation5 + $0x308] sm:$0xff] }
  0x5b   :  { %1932 = vmatpush.bf16.msra.mxu2 %v3336_v30  ;;  %1901 = vmatmul.bf16.vlgmr.msrb.gmra.mxu3 %v245_v34  ;;  %v3363_v30 = vld [vmem:[#allocation5 + $0x390] sm:$0xff]  ;;  %v115_v34 = vld [vmem:[#allocation2 + $0x20] sm:$0xff] }
  0x5c   :  { %1945 = vmatpush.bf16.msra.mxu3 %v3344_v31  ;;  %v3371_v31 = vld [vmem:[#allocation5 + $0x3d0] sm:$0xff]  ;;  %198 = vst [vmem:[#allocation1] ss:$4 sm:$0xff] %v115_v34 }
  0x5d   :  { %1907 = vmatpush.bf16.msra.mxu0 %v3319_v36  ;;  %v121_v35 = vld [vmem:[#allocation2 + $0x50] sm:$0xff]  ;;  %v127_v36 = vld [vmem:[#allocation2 + $0x80] sm:$0xff] }
  0x5e   :  { %1920 = vmatpush.bf16.msra.mxu1 %v3327_v37  ;;  %v3362_v37 = vld [vmem:[#allocation5 + $0x388] sm:$0xff]  ;;  %199 = vst [vmem:[#allocation1 + $0x1] ss:$4 sm:$0xff] %v121_v35 }
  0x5f   :  { %1933 = vmatpush.bf16.msra.mxu2 %v3335_v38  ;;  %v3370_v38 = vld [vmem:[#allocation5 + $0x3c8] sm:$0xff]  ;;  %200 = vst [vmem:[#allocation1 + $0x2] ss:$4 sm:$0xff] %v127_v36  ;;  %v3415_v36 = vld [vmem:[#allocation5 + $0x530] sm:$0xff] }
  0x60   :  { %1946 = vmatpush.bf16.msra.mxu3 %v3343_v39  ;;  %v133_v39 = vld [vmem:[#allocation2 + $0xb0] sm:$0xff] }
  0x61   :  { %1908 = vmatpush.bf16.msra.mxu0 %v3318_v40  ;;  %v3345_v40 = vld [vmem:[#allocation5 + $0x300] sm:$0xff]  ;;  %201 = vst [vmem:[#allocation1 + $0x3] ss:$4 sm:$0xff] %v133_v39  ;;  %v3439_v39 = vld [vmem:[#allocation5 + $0x5f0] sm:$0xff] }
  0x62   :  { %1921 = vmatpush.bf16.msra.mxu1 %v3326_v41  ;;  %v3353_v41 = vld [vmem:[#allocation5 + $0x340] sm:$0xff] }
  0x63   :  { %1934 = vmatpush.bf16.msra.mxu2 %v3334_v42  ;;  %v3361_v42 = vld [vmem:[#allocation5 + $0x380] sm:$0xff] }
  0x64   :  { %1947 = vmatpush.bf16.msra.mxu3 %v3342_v43  ;;  %v3369_v43 = vld [vmem:[#allocation5 + $0x3c0] sm:$0xff] }
  0x65   :  { %1909 = vmatpush.bf16.msra.mxu0 %v3317_v44  ;;  %v3384_v44 = vld [vmem:[#allocation5 + $0x438] sm:$0xff] }
  0x66   :  { %1922 = vmatpush.bf16.msra.mxu1 %v3325_v45  ;;  %v3392_v45 = vld [vmem:[#allocation5 + $0x478] sm:$0xff] }
  0x67   :  { %1935 = vmatpush.bf16.msra.mxu2 %v3333_v46  ;;  %v194_v46 = vld.sshfl [vmem:[#allocation1 + $0x20] sm:$0xff pattern:$0x73625140] }
  0x68   :  { %1948 = vmatpush.bf16.msra.mxu3 %v3341_v47  ;;  %v196_v47 = vld.sshfl [vmem:[#allocation1 + $0x30] sm:$0xff pattern:$0x73625140] }
  0x69   :  { %1910 = vmatpush.bf16.msra.mxu0 %v3316_v48  ;;  %v195_v48 = vld.sshfl [vmem:[#allocation1 + $0x28] sm:$0xff pattern:$0x73625140] }
  0x6a   :  { %1923 = vmatpush.bf16.msra.mxu1 %v3324_v49  ;;  %v197_v49 = vld.sshfl [vmem:[#allocation1 + $0x38] sm:$0xff pattern:$0x73625140] }
  0x6b   :  { %1936 = vmatpush.bf16.msra.mxu2 %v3332_v50  ;;  %v3400_v50 = vld [vmem:[#allocation5 + $0x4b8] sm:$0xff] }
  0x6c   :  { %1949 = vmatpush.bf16.msra.mxu3 %v3340_v51  ;;  %v3408_v51 = vld [vmem:[#allocation5 + $0x4f8] sm:$0xff] }
  0x6d   :  { %1911 = vmatpush.bf16.msra.mxu0 %v3315_v52  ;;  %v250_v52 = vpack.c.bf16 %v194_v46, %v194_v46  ;;  %v3413_v46 = vld [vmem:[#allocation5 + $0x520] sm:$0xff] }
  0x6e   :  { %1924 = vmatpush.bf16.msra.mxu1 %v3323_v53  ;;  %v252_v53 = vpack.c.bf16 %v196_v47, %v196_v47  ;;  %v3421_v47 = vld [vmem:[#allocation5 + $0x560] sm:$0xff] }
  0x6f   :  { %1937 = vmatpush.bf16.msra.mxu2 %v3331_v54  ;;  %v251_v54 = vpack.c.bf16 %v195_v48, %v195_v48 }
  0x70   :  { %1950 = vmatpush.bf16.msra.mxu3 %v3339_v55  ;;  %v253_v55 = vpack.c.bf16 %v197_v49, %v197_v49 }
  0x71   :  { %1912 = vmatpush.bf16.msra.mxu0 %v3314_v56  ;;  %v3383_v56 = vld [vmem:[#allocation5 + $0x430] sm:$0xff] }
  0x72   :  { %1925 = vmatpush.bf16.msra.mxu1 %v3322_v57  ;;  %v3391_v57 = vld [vmem:[#allocation5 + $0x470] sm:$0xff] }
  0x73   :  { %1938 = vmatpush.bf16.msra.mxu2 %v3330_v58  ;;  %v3399_v58 = vld [vmem:[#allocation5 + $0x4b0] sm:$0xff] }
  0x74   :  { %1951 = vmatpush.bf16.msra.mxu3 %v3338_v59  ;;  %v3407_v59 = vld [vmem:[#allocation5 + $0x4f0] sm:$0xff] }
  0x75   :  { %1913 = vmatpush.bf16.msra.mxu0 %v3313_v60  ;;  %v3382_v60 = vld [vmem:[#allocation5 + $0x428] sm:$0xff] }
  0x76   :  { %1926 = vmatpush.bf16.msra.mxu1 %v3321_v61  ;;  %v3390_v61 = vld [vmem:[#allocation5 + $0x468] sm:$0xff] }
  0x77   :  { %1939 = vmatpush.bf16.msra.mxu2 %v3329_v62  ;;  %v3398_v62 = vld [vmem:[#allocation5 + $0x4a8] sm:$0xff] }
  0x78   :  { %1952 = vmatpush.bf16.msra.mxu3 %v3337_v63  ;;  %1914 = vmatmul.bf16.vlgmr.msra.gmra.mxu0 %v246_v8  ;;  %v3406_v63 = vld [vmem:[#allocation5 + $0x4e8] sm:$0xff]  ;;  %v3379_v8 = vld [vmem:[#allocation5 + $0x410] sm:$0xff] }
  0x79   :  { %1958 = vmatpush.bf16.msrb.mxu0 %v3352_v0  ;;  %1927 = vmatmul.bf16.vlgmr.msra.gmra.mxu1 %v247_v10  ;;  %v3381_v0 = vld [vmem:[#allocation5 + $0x420] sm:$0xff]  ;;  %v3395_v10 = vld [vmem:[#allocation5 + $0x490] sm:$0xff] }
  0x7a   :  { %1971 = vmatpush.bf16.msrb.mxu1 %v3360_v1  ;;  %1940 = vmatmul.bf16.vlgmr.msra.gmra.mxu2 %v248_v9  ;;  %v3389_v1 = vld [vmem:[#allocation5 + $0x460] sm:$0xff]  ;;  %v3387_v9 = vld [vmem:[#allocation5 + $0x450] sm:$0xff] }
  0x7b   :  { %1984 = vmatpush.bf16.msrb.mxu2 %v3368_v6  ;;  %1953 = vmatmul.bf16.vlgmr.msra.gmra.mxu3 %v249_v11  ;;  %v3396_v6 = vld [vmem:[#allocation5 + $0x498] sm:$0xff]  ;;  %v3403_v11 = vld [vmem:[#allocation5 + $0x4d0] sm:$0xff] }
  0x7c   :  { %1997 = vmatpush.bf16.msrb.mxu3 %v3376_v7  ;;  %v3404_v7 = vld [vmem:[#allocation5 + $0x4d8] sm:$0xff] }
  0x7d   :  { %1959 = vmatpush.bf16.msrb.mxu0 %v3351_v12  ;;  %v3378_v12 = vld [vmem:[#allocation5 + $0x408] sm:$0xff] }
  0x7e   :  { %1972 = vmatpush.bf16.msrb.mxu1 %v3359_v13  ;;  %v116_v13 = vld [vmem:[#allocation2 + $0x28] sm:$0xff] }
  0x7f   :  { %1985 = vmatpush.bf16.msrb.mxu2 %v3367_v14  ;;  %v122_v14 = vld [vmem:[#allocation2 + $0x58] sm:$0xff]  ;;  %202 = vst [vmem:[#allocation1 + $0x20] ss:$4 sm:$0xff] %v116_v13 }
  0x80   :  { %1998 = vmatpush.bf16.msrb.mxu3 %v3375_v15  ;;  %v3386_v15 = vld [vmem:[#allocation5 + $0x448] sm:$0xff]  ;;  %203 = vst [vmem:[#allocation1 + $0x21] ss:$4 sm:$0xff] %v122_v14 }
  0x81   :  { %1960 = vmatpush.bf16.msrb.mxu0 %v3350_v16  ;;  %v128_v16 = vld [vmem:[#allocation2 + $0x88] sm:$0xff] }
  0x82   :  { %1973 = vmatpush.bf16.msrb.mxu1 %v3358_v17  ;;  %v134_v17 = vld [vmem:[#allocation2 + $0xb8] sm:$0xff]  ;;  %204 = vst [vmem:[#allocation1 + $0x22] ss:$4 sm:$0xff] %v128_v16 }
  0x83   :  { %1986 = vmatpush.bf16.msrb.mxu2 %v3366_v18  ;;  %v3394_v18 = vld [vmem:[#allocation5 + $0x488] sm:$0xff]  ;;  %205 = vst [vmem:[#allocation1 + $0x23] ss:$4 sm:$0xff] %v134_v17 }
  0x84   :  { %1999 = vmatpush.bf16.msrb.mxu3 %v3374_v19  ;;  %v3402_v19 = vld [vmem:[#allocation5 + $0x4c8] sm:$0xff] }
  0x85   :  { %1961 = vmatpush.bf16.msrb.mxu0 %v3349_v20  ;;  %v3377_v20 = vld [vmem:[#allocation5 + $0x400] sm:$0xff] }
  0x86   :  { %1974 = vmatpush.bf16.msrb.mxu1 %v3357_v21  ;;  %v3385_v21 = vld [vmem:[#allocation5 + $0x440] sm:$0xff] }
  0x87   :  { %1987 = vmatpush.bf16.msrb.mxu2 %v3365_v22  ;;  %v3393_v22 = vld [vmem:[#allocation5 + $0x480] sm:$0xff] }
  0x88   :  { %2000 = vmatpush.bf16.msrb.mxu3 %v3373_v23  ;;  %v3401_v23 = vld [vmem:[#allocation5 + $0x4c0] sm:$0xff] }
  0x89   :  { %1962 = vmatpush.bf16.msrb.mxu0 %v3348_v24  ;;  %v3416_v24 = vld [vmem:[#allocation5 + $0x538] sm:$0xff] }
  0x8a   :  { %1975 = vmatpush.bf16.msrb.mxu1 %v3356_v25  ;;  %v3424_v25 = vld [vmem:[#allocation5 + $0x578] sm:$0xff]  ;;  %v211_v14 = vld.sshfl [vmem:[#allocation1 + $0x28] sm:$0xff pattern:$0x73625140] }
  0x8b   :  { %1988 = vmatpush.bf16.msrb.mxu2 %v3364_v26  ;;  %v206_v26 = vld.sshfl [vmem:[#allocation1] sm:$0xff pattern:$0x73625140]  ;;  %v213_v16 = vld.sshfl [vmem:[#allocation1 + $0x38] sm:$0xff pattern:$0x73625140] }
  0x8c   :  { %2001 = vmatpush.bf16.msrb.mxu3 %v3372_v27  ;;  %v208_v27 = vld.sshfl [vmem:[#allocation1 + $0x10] sm:$0xff pattern:$0x73625140]  ;;  %v210_v13 = vld.sshfl [vmem:[#allocation1 + $0x20] sm:$0xff pattern:$0x73625140] }
  0x8d   :  { %1963 = vmatpush.bf16.msrb.mxu0 %v3347_v28  ;;  %v207_v28 = vld.sshfl [vmem:[#allocation1 + $0x8] sm:$0xff pattern:$0x73625140]  ;;  %v258_v17 = vpack.c.bf16 %v210_v13, %v210_v13 }
  0x8e   :  { %1976 = vmatpush.bf16.msrb.mxu1 %v3355_v29  ;;  %v209_v29 = vld.sshfl [vmem:[#allocation1 + $0x18] sm:$0xff pattern:$0x73625140]  ;;  %v255_v34 = vpack.c.bf16 %v207_v28, %v207_v28 }
  0x8f   :  { %1989 = vmatpush.bf16.msrb.mxu2 %v3363_v30  ;;  %v3432_v30 = vld [vmem:[#allocation5 + $0x5b8] sm:$0xff]  ;;  %v257_v35 = vpack.c.bf16 %v209_v29, %v209_v29 }
  0x90   :  { %2002 = vmatpush.bf16.msrb.mxu3 %v3371_v31  ;;  %v3440_v31 = vld [vmem:[#allocation5 + $0x5f8] sm:$0xff] }
  0x91   :  { %1964 = vmatpush.bf16.msrb.mxu0 %v3346_v32  ;;  %v254_v32 = vpack.c.bf16 %v206_v26, %v206_v26 }
  0x92   :  { %1977 = vmatpush.bf16.msrb.mxu1 %v3354_v33  ;;  %v256_v33 = vpack.c.bf16 %v208_v27, %v208_v27 }
  0x93   :  { %1990 = vmatpush.bf16.msrb.mxu2 %v3362_v37  ;;  %v3423_v37 = vld [vmem:[#allocation5 + $0x570] sm:$0xff] }
  0x94   :  { %2003 = vmatpush.bf16.msrb.mxu3 %v3370_v38  ;;  %v3431_v38 = vld [vmem:[#allocation5 + $0x5b0] sm:$0xff] }
  0x95   :  { %1965 = vmatpush.bf16.msrb.mxu0 %v3345_v40  ;;  %v3414_v40 = vld [vmem:[#allocation5 + $0x528] sm:$0xff] }
  0x96   :  { %1978 = vmatpush.bf16.msrb.mxu1 %v3353_v41  ;;  %v3422_v41 = vld [vmem:[#allocation5 + $0x568] sm:$0xff] }
  0x97   :  { %1991 = vmatpush.bf16.msrb.mxu2 %v3361_v42  ;;  %v3477_v42 = vld [vmem:[%s3739_s2] ss:$0 sm:$0xff] }
  0x98   :  { %2004 = vmatpush.bf16.msrb.mxu3 %v3369_v43  ;;  %1966 = vmatmul.bf16.vlgmr.msrb.gmra.mxu0 %v250_v52  ;;  %v3430_v43 = vld [vmem:[#allocation5 + $0x5a8] sm:$0xff] }
  0x99   :  { %2010 = vmatpush.bf16.msra.mxu0 %v3384_v44  ;;  %1979 = vmatmul.bf16.vlgmr.msrb.gmra.mxu1 %v251_v54  ;;  %v3438_v44 = vld [vmem:[#allocation5 + $0x5e8] sm:$0xff]  ;;  %v3420_v54 = vld [vmem:[#allocation5 + $0x558] sm:$0xff] }
  0x9a   :  { %2023 = vmatpush.bf16.msra.mxu1 %v3392_v45  ;;  %1992 = vmatmul.bf16.vlgmr.msrb.gmra.mxu2 %v252_v53  ;;  %v3412_v53 = vld [vmem:[#allocation5 + $0x518] sm:$0xff] }
  0x9b   :  { %2036 = vmatpush.bf16.msra.mxu2 %v3400_v50  ;;  %2005 = vmatmul.bf16.vlgmr.msrb.gmra.mxu3 %v253_v55  ;;  %v3429_v50 = vld [vmem:[#allocation5 + $0x5a0] sm:$0xff]  ;;  %v3428_v55 = vld [vmem:[#allocation5 + $0x598] sm:$0xff] }
  0x9c   :  { %2049 = vmatpush.bf16.msra.mxu3 %v3408_v51  ;;  %v3437_v51 = vld [vmem:[#allocation5 + $0x5e0] sm:$0xff] }
  0x9d   :  { %2011 = vmatpush.bf16.msra.mxu0 %v3383_v56  ;;  %v3436_v56 = vld [vmem:[#allocation5 + $0x5d8] sm:$0xff] }
  0x9e   :  { %2024 = vmatpush.bf16.msra.mxu1 %v3391_v57 }
  0x9f   :  { %2037 = vmatpush.bf16.msra.mxu2 %v3399_v58 }
  0xa0   :  { %2050 = vmatpush.bf16.msra.mxu3 %v3407_v59 }
  0xa1   :  { %2012 = vmatpush.bf16.msra.mxu0 %v3382_v60 }
  0xa2   :  { %2025 = vmatpush.bf16.msra.mxu1 %v3390_v61  ;;  %v3411_v61 = vld [vmem:[#allocation5 + $0x510] sm:$0xff] }
  0xa3   :  { %2038 = vmatpush.bf16.msra.mxu2 %v3398_v62  ;;  %v3419_v62 = vld [vmem:[#allocation5 + $0x550] sm:$0xff] }
  0xa4   :  { %2051 = vmatpush.bf16.msra.mxu3 %v3406_v63 }
  0xa5   :  { %2013 = vmatpush.bf16.msra.mxu0 %v3381_v0 }
  0xa6   :  { %2026 = vmatpush.bf16.msra.mxu1 %v3389_v1  ;;  %v3427_v1 = vld [vmem:[#allocation5 + $0x590] sm:$0xff] }
  0xa7   :  { %2039 = vmatpush.bf16.msra.mxu2 %v3397_v2  ;;  %v3435_v2 = vld [vmem:[#allocation5 + $0x5d0] sm:$0xff] }
  0xa8   :  { %2052 = vmatpush.bf16.msra.mxu3 %v3405_v3  ;;  %v3410_v3 = vld [vmem:[#allocation5 + $0x508] sm:$0xff] }
  0xa9   :  { %2014 = vmatpush.bf16.msra.mxu0 %v3380_v4  ;;  %v3418_v4 = vld [vmem:[#allocation5 + $0x548] sm:$0xff] }
  0xaa   :  { %2027 = vmatpush.bf16.msra.mxu1 %v3388_v5  ;;  %v3426_v5 = vld [vmem:[#allocation5 + $0x588] sm:$0xff] }
  0xab   :  { %2040 = vmatpush.bf16.msra.mxu2 %v3396_v6  ;;  %v3434_v6 = vld [vmem:[#allocation5 + $0x5c8] sm:$0xff] }
  0xac   :  { %2053 = vmatpush.bf16.msra.mxu3 %v3404_v7 }
  0xad   :  { %2015 = vmatpush.bf16.msra.mxu0 %v3379_v8  ;;  %v3409_v8 = vld [vmem:[#allocation5 + $0x500] sm:$0xff] }
  0xae   :  { %2028 = vmatpush.bf16.msra.mxu1 %v3387_v9 }
  0xaf   :  { %2041 = vmatpush.bf16.msra.mxu2 %v3395_v10  ;;  %v3417_v10 = vld [vmem:[#allocation5 + $0x540] sm:$0xff] }
  0xb0   :  { %2054 = vmatpush.bf16.msra.mxu3 %v3403_v11  ;;  %v3425_v11 = vld [vmem:[#allocation5 + $0x580] sm:$0xff] }
  0xb1   :  { %2016 = vmatpush.bf16.msra.mxu0 %v3378_v12  ;;  %v3433_v12 = vld [vmem:[#allocation5 + $0x5c0] sm:$0xff] }
  0xb2   :  { %2029 = vmatpush.bf16.msra.mxu1 %v3386_v15  ;;  %v212_v15 = vld.sshfl [vmem:[#allocation1 + $0x30] sm:$0xff pattern:$0x73625140] }
  0xb3   :  { %2042 = vmatpush.bf16.msra.mxu2 %v3394_v18  ;;  %v259_v18 = vpack.c.bf16 %v211_v14, %v211_v14  ;;  %v3453_v14 = vld [vmem:[#allocation8 + $0x20] sm:$0xff] }
  0xb4   :  { %2055 = vmatpush.bf16.msra.mxu3 %v3402_v19  ;;  %v260_v19 = vpack.c.bf16 %v212_v15, %v212_v15 }
  0xb5   :  { %2017 = vmatpush.bf16.msra.mxu0 %v3377_v20  ;;  %v1811_v45 = vpop.f32.mrf.mxu0  ;;  %v261_v20 = vpack.c.bf16 %v213_v16, %v213_v16  ;;  %v3452_v16 = vld [vmem:[#allocation8 + $0x18] sm:$0xff] }
  0xb6   :  { %2030 = vmatpush.bf16.msra.mxu1 %v3385_v21  ;;  %v1812_v48 = vadd.f32 %v3477_v42, %v1811_v45  ;;  %v1824_v49 = vpop.f32.mrf.mxu1 }
  0xb7   :  { %2043 = vmatpush.bf16.msra.mxu2 %v3393_v22 }
  0xb8   :  { %2056 = vmatpush.bf16.msra.mxu3 %v3401_v23  ;;  %2018 = vmatmul.bf16.vlgmr.msra.gmra.mxu0 %v254_v32  ;;  %v1825_v52 = vadd.f32 %v1824_v49, %v1812_v48  ;;  %v3448_v49 = vld [vmem:[#allocation7 + $0x38] sm:$0xff] }
  0xb9   :  { %2062 = vmatpush.bf16.msrb.mxu0 %v3416_v24  ;;  %2031 = vmatmul.bf16.vlgmr.msra.gmra.mxu1 %v255_v34 }
  0xba   :  { %2075 = vmatpush.bf16.msrb.mxu1 %v3424_v25  ;;  %2044 = vmatmul.bf16.vlgmr.msra.gmra.mxu2 %v256_v33 }
  0xbb   :  { %2088 = vmatpush.bf16.msrb.mxu2 %v3432_v30  ;;  %2057 = vmatmul.bf16.vlgmr.msra.gmra.mxu3 %v257_v35 }
  0xbc   :  { %2101 = vmatpush.bf16.msrb.mxu3 %v3440_v31 }
  0xbd   :  { %2063 = vmatpush.bf16.msrb.mxu0 %v3415_v36  ;;  %v1837_v57 = vpop.f32.mrf.mxu2  ;;  %v1813_v60 = vpop.f32.mrf.mxu0 }
  0xbe   :  { %2076 = vmatpush.bf16.msrb.mxu1 %v3423_v37  ;;  %v1838_v58 = vadd.f32 %v1837_v57, %v1825_v52  ;;  %v1850_v59 = vpop.f32.mrf.mxu3  ;;  %v1826_v0 = vpop.f32.mrf.mxu1  ;;  %v3447_v52 = vld [vmem:[#allocation7 + $0x30] sm:$0xff]  ;;  %v3444_v57 = vld [vmem:[#allocation7 + $0x18] sm:$0xff] }
  0xbf   :  { %2089 = vmatpush.bf16.msrb.mxu2 %v3431_v38 }
  0xc0   :  { %2102 = vmatpush.bf16.msrb.mxu3 %v3439_v39  ;;  %v1851_v63 = vadd.f32 %v1850_v59, %v1838_v58  ;;  %v3443_v59 = vld [vmem:[#allocation7 + $0x10] sm:$0xff] }
  0xc1   :  { %2064 = vmatpush.bf16.msrb.mxu0 %v3414_v40 }
  0xc2   :  { %2077 = vmatpush.bf16.msrb.mxu1 %v3422_v41 }
  0xc3   :  { %2090 = vmatpush.bf16.msrb.mxu2 %v3430_v43 }
  0xc4   :  { %2103 = vmatpush.bf16.msrb.mxu3 %v3438_v44 }
  0xc5   :  { %2065 = vmatpush.bf16.msrb.mxu0 %v3413_v46  ;;  %v1839_v7 = vpop.f32.mrf.mxu2 }
  0xc6   :  { %2078 = vmatpush.bf16.msrb.mxu1 %v3421_v47  ;;  %v1852_v9 = vpop.f32.mrf.mxu3 }
  0xc7   :  { %2091 = vmatpush.bf16.msrb.mxu2 %v3429_v50  ;;  %v3455_v9 = vld [vmem:[#allocation8 + $0x30] sm:$0xff] }
  0xc8   :  { %2104 = vmatpush.bf16.msrb.mxu3 %v3437_v51 }
  0xc9   :  { %2066 = vmatpush.bf16.msrb.mxu0 %v3412_v53  ;;  %v3446_v53 = vld [vmem:[#allocation7 + $0x28] sm:$0xff] }
  0xca   :  { %2079 = vmatpush.bf16.msrb.mxu1 %v3420_v54 }
  0xcb   :  { %2092 = vmatpush.bf16.msrb.mxu2 %v3428_v55 }
  0xcc   :  { %2105 = vmatpush.bf16.msrb.mxu3 %v3436_v56  ;;  %v3445_v56 = vld [vmem:[#allocation7 + $0x20] sm:$0xff] }
  0xcd   :  { %2067 = vmatpush.bf16.msrb.mxu0 %v3411_v61  ;;  %v3442_v61 = vld [vmem:[#allocation7 + $0x8] sm:$0xff] }
  0xce   :  { %2080 = vmatpush.bf16.msrb.mxu1 %v3419_v62 }
  0xcf   :  { %2093 = vmatpush.bf16.msrb.mxu2 %v3427_v1 }
  0xd0   :  { %2106 = vmatpush.bf16.msrb.mxu3 %v3435_v2  ;;  %v3441_v2 = vld [vmem:[#allocation7] sm:$0xff] }
  0xd1   :  { %2068 = vmatpush.bf16.msrb.mxu0 %v3410_v3 }
  0xd2   :  { %2081 = vmatpush.bf16.msrb.mxu1 %v3418_v4 }
  0xd3   :  { %2094 = vmatpush.bf16.msrb.mxu2 %v3426_v5 }
  0xd4   :  { %2107 = vmatpush.bf16.msrb.mxu3 %v3434_v6  ;;  %v3456_v6 = vld [vmem:[#allocation8 + $0x38] sm:$0xff] }
  0xd5   :  { %2069 = vmatpush.bf16.msrb.mxu0 %v3409_v8  ;;  %v1863_v21 = vpop.f32.mrf.mxu0 }
  0xd6   :  { %2082 = vmatpush.bf16.msrb.mxu1 %v3417_v10  ;;  %v1864_v22 = vadd.f32 %v1863_v21, %v1851_v63  ;;  %v1876_v23 = vpop.f32.mrf.mxu1  ;;  %v3451_v21 = vld [vmem:[#allocation8 + $0x10] sm:$0xff] }
  0xd7   :  { %2095 = vmatpush.bf16.msrb.mxu2 %v3425_v11 }
  0xd8   :  { %2108 = vmatpush.bf16.msrb.mxu3 %v3433_v12  ;;  %2070 = vmatmul.bf16.vlgmr.msrb.gmra.mxu0 %v258_v17  ;;  %v1877_v24 = vadd.f32 %v1876_v23, %v1864_v22  ;;  %v3454_v12 = vld [vmem:[#allocation8 + $0x28] sm:$0xff] }
  0xd9   :  { %2083 = vmatmul.bf16.vlgmr.msrb.gmra.mxu1 %v259_v18  ;;  %2184 = vmatpush.bf16.msra.mxu0 %v3448_v49  ;;  %v3479_v49 = vld [vmem:[%s3743_s6] ss:$0 sm:$0xff] }
  0xda   :  { %2096 = vmatmul.bf16.vlgmr.msrb.gmra.mxu2 %v260_v19  ;;  %2267 = vmatpush.bf16.msra.mxu1 %v3456_v6 }
  0xdb   :  { %2109 = vmatmul.bf16.vlgmr.msrb.gmra.mxu3 %v261_v20 }
  0xdd   :  { %v1889_v25 = vpop.f32.mrf.mxu2  ;;  %v1865_v28 = vpop.f32.mrf.mxu0  ;;  %2185 = vmatpush.bf16.msra.mxu0 %v3447_v52 }
  0xde   :  { %v1890_v26 = vadd.f32 %v1889_v25, %v1877_v24  ;;  %v1902_v27 = vpop.f32.mrf.mxu3  ;;  %v1878_v30 = vpop.f32.mrf.mxu1  ;;  %2268 = vmatpush.bf16.msra.mxu1 %v3455_v9 }
  0xe0   :  { %v1903_v29 = vadd.f32 %v1902_v27, %v1890_v26 }
  0xe1   :  { %2186 = vmatpush.bf16.msra.mxu0 %v3446_v53 }
  0xe2   :  { %2269 = vmatpush.bf16.msra.mxu1 %v3454_v12 }
  0xe5   :  { %v1891_v31 = vpop.f32.mrf.mxu2  ;;  %2187 = vmatpush.bf16.msra.mxu0 %v3445_v56 }
  0xe6   :  { %v1904_v32 = vpop.f32.mrf.mxu3  ;;  %2270 = vmatpush.bf16.msra.mxu1 %v3453_v14 }
  0xe9   :  { %2188 = vmatpush.bf16.msra.mxu0 %v3444_v57 }
  0xea   :  { %2271 = vmatpush.bf16.msra.mxu1 %v3452_v16 }
  0xed   :  { %2189 = vmatpush.bf16.msra.mxu0 %v3443_v59 }
  0xee   :  { %2272 = vmatpush.bf16.msra.mxu1 %v3451_v21 }
  0xf1   :  { %2190 = vmatpush.bf16.msra.mxu0 %v3442_v61 }
  0xf5   :  { %v1915_v33 = vpop.f32.mrf.mxu0  ;;  %2191 = vmatpush.bf16.msra.mxu0 %v3441_v2 }
  0xf6   :  { %v1916_v34 = vadd.f32 %v1915_v33, %v1903_v29  ;;  %v1928_v35 = vpop.f32.mrf.mxu1  ;;  %v3450_v33 = vld [vmem:[#allocation8 + $0x8] sm:$0xff] }
  0xf7   :  { %2273 = vmatpush.bf16.msra.mxu1 %v3450_v33 }
  0xf8   :  { %v1929_v36 = vadd.f32 %v1928_v35, %v1916_v34  ;;  %v3449_v34 = vld [vmem:[#allocation8] sm:$0xff]  ;;  %v3464_v35 = vld [vmem:[#allocation10 + $0x38] sm:$0xff] }
  0xf9   :  { %2350 = vmatpush.bf16.msra.mxu2 %v3464_v35 }
  0xfb   :  { %2274 = vmatpush.bf16.msra.mxu1 %v3449_v34 }
  0xfd   :  { %v1941_v37 = vpop.f32.mrf.mxu2  ;;  %v1917_v40 = vpop.f32.mrf.mxu0 }
  0xfe   :  { %v1942_v38 = vadd.f32 %v1941_v37, %v1929_v36  ;;  %v1954_v39 = vpop.f32.mrf.mxu3  ;;  %v1930_v42 = vpop.f32.mrf.mxu1  ;;  %v3463_v36 = vld [vmem:[#allocation10 + $0x30] sm:$0xff]  ;;  %v3462_v37 = vld [vmem:[#allocation10 + $0x28] sm:$0xff] }
  0xff   :  { %2351 = vmatpush.bf16.msra.mxu2 %v3463_v36  ;;  %v3459_v40 = vld [vmem:[#allocation10 + $0x10] sm:$0xff] }
 0x100   :  { %v1955_v41 = vadd.f32 %v1954_v39, %v1942_v38  ;;  %v3461_v38 = vld [vmem:[#allocation10 + $0x20] sm:$0xff]  ;;  %v3460_v39 = vld [vmem:[#allocation10 + $0x18] sm:$0xff] }
 0x103   :  { %2352 = vmatpush.bf16.msra.mxu2 %v3462_v37 }
 0x105   :  { %v1943_v43 = vpop.f32.mrf.mxu2 }
 0x106   :  { %v1956_v44 = vpop.f32.mrf.mxu3 }
 0x107   :  { %2353 = vmatpush.bf16.msra.mxu2 %v3461_v38 }
 0x10b   :  { %2354 = vmatpush.bf16.msra.mxu2 %v3460_v39 }
 0x10f   :  { %2355 = vmatpush.bf16.msra.mxu2 %v3459_v40 }
 0x115   :  { %v1967_v45 = vpop.f32.mrf.mxu0 }
 0x116   :  { %v1980_v46 = vpop.f32.mrf.mxu1  ;;  %v1968_v63 = vadd.f32 %v1967_v45, %v1955_v41  ;;  %v3478_v41 = vld [vmem:[%s3741_s4] ss:$0 sm:$0xff] }
 0x118   :  { %v1981_v4 = vadd.f32 %v1980_v46, %v1968_v63 }
 0x11d   :  { %v1993_v47 = vpop.f32.mrf.mxu2  ;;  %v1969_v50 = vpop.f32.mrf.mxu0 }
 0x11e   :  { %v2006_v48 = vpop.f32.mrf.mxu3  ;;  %v1982_v51 = vpop.f32.mrf.mxu1  ;;  %v1994_v5 = vadd.f32 %v1993_v47, %v1981_v4  ;;  %v3458_v47 = vld [vmem:[#allocation10 + $0x8] sm:$0xff] }
 0x11f   :  { %2356 = vmatpush.bf16.msra.mxu2 %v3458_v47 }
 0x120   :  { %v2007_v10 = vadd.f32 %v2006_v48, %v1994_v5  ;;  %v3457_v48 = vld [vmem:[#allocation10] sm:$0xff] }
 0x123   :  { %2357 = vmatpush.bf16.msra.mxu2 %v3457_v48 }
 0x125   :  { %v1995_v54 = vpop.f32.mrf.mxu2 }
 0x126   :  { %v2008_v55 = vpop.f32.mrf.mxu3 }
 0x127   :  { %v3480_v55 = vld [vmem:[%s3745_s8] ss:$0 sm:$0xff] }
 0x135   :  { %v2019_v58 = vpop.f32.mrf.mxu0 }
 0x136   :  { %v2032_v60 = vpop.f32.mrf.mxu1  ;;  %v2020_v11 = vadd.f32 %v2019_v58, %v2007_v10 }
 0x138   :  { %v2033_v13 = vadd.f32 %v2032_v60, %v2020_v11 }
 0x13d   :  { %v2045_v62 = vpop.f32.mrf.mxu2  ;;  %v2021_v1 = vpop.f32.mrf.mxu0 }
 0x13e   :  { %v2058_v0 = vpop.f32.mrf.mxu3  ;;  %v2034_v3 = vpop.f32.mrf.mxu1  ;;  %v2046_v15 = vadd.f32 %v2045_v62, %v2033_v13 }
 0x140   :  { %v2059_v17 = vadd.f32 %v2058_v0, %v2046_v15 }
 0x145   :  { %v2047_v7 = vpop.f32.mrf.mxu2 }
 0x146   :  { %v2060_v8 = vpop.f32.mrf.mxu3 }
 0x155   :  { %v2071_v18 = vpop.f32.mrf.mxu0 }
 0x156   :  { %v2084_v19 = vpop.f32.mrf.mxu1  ;;  %v2072_v20 = vadd.f32 %v2071_v18, %v2059_v17 }
 0x158   :  { %v2085_v22 = vadd.f32 %v2084_v19, %v2072_v20 }
 0x15d   :  { %v2097_v23 = vpop.f32.mrf.mxu2  ;;  %v2073_v26 = vpop.f32.mrf.mxu0 }
 0x15e   :  { %v2110_v24 = vpop.f32.mrf.mxu3  ;;  %v2098_v25 = vadd.f32 %v2097_v23, %v2085_v22  ;;  %v2086_v27 = vpop.f32.mrf.mxu1 }
 0x160   :  { %v2111_v28 = vadd.f32 %v2110_v24, %v2098_v25 }
 0x162   :  { %v2114_v29 = vmax.f32 %v2111_v28, 0.0 }
 0x164   :  { %v2115_v30 = vpack.c.bf16 %v2114_v29, %v2114_v29 }
 0x165   :  { %v2099_v31 = vpop.f32.mrf.mxu2 }
 0x166   :  { %v2112_v32 = vpop.f32.mrf.mxu3  ;;  %2192 = vmatmul.bf16.vlgmr.msra.gmra.mxu0 %v2115_v30 }
 0x1e3   :  { %v2193_v42 = vpop.f32.mrf.mxu0 }
 0x1e4   :  { %v2194_v43 = vadd.f32 %v3478_v41, %v2193_v42 }
 0x1e6   :  { %v2197_v44 = vmax.f32 %v2194_v43, 0.0 }
 0x1e8   :  { %v2198_v45 = vpack.c.bf16 %v2197_v44, %v2197_v44 }
 0x1ea   :  { %2275 = vmatmul.bf16.vlgmr.msra.gmra.mxu1 %v2198_v45 }
 0x1eb   :  { %v2195_v46 = vpop.f32.mrf.mxu0 }
 0x267   :  { %v2276_v50 = vpop.f32.mrf.mxu1 }
 0x268   :  { %v2277_v51 = vadd.f32 %v3479_v49, %v2276_v50 }
 0x26a   :  { %v2280_v52 = vmax.f32 %v2277_v51, 0.0 }
 0x26c   :  { %v2281_v53 = vpack.c.bf16 %v2280_v52, %v2280_v52 }
 0x26e   :  { %2358 = vmatmul.bf16.vlgmr.msra.gmra.mxu2 %v2281_v53 }
 0x26f   :  { %v2278_v54 = vpop.f32.mrf.mxu1 }
 0x2f1   :  { %v2359_v56 = vpop.f32.mrf.mxu2 }
 0x2f2   :  { %v2360_v57 = vadd.f32 %v3480_v55, %v2359_v56 }
 0x2f4   :  { %2363 = vst [vmem:[#allocation11] sm:$0xff] %v2360_v57 }
 0x2f9   :  { %v2361_v58 = vpop.f32.mrf.mxu2 }
 0x2fa   :  { %2367 = vsyncadd [#allocation4], 96  ;;  %s2370_s20 = sshll.u32 %s3746_s9, 4  ;;  %s3642_s6 = smov [#allocation11]   ;;  %s2371_s20 = int_to_ptr.hbm [resolvable:$true] %s2370_s20 }
 0x2fb   :  { %s2368_s21 = sshll.u32 %s3642_s6, 4  ;;  %s3643_s1 = smov 32   ;;  %s2369_s21 = int_to_ptr.vmem [resolvable:$true] %s2368_s21 }
 0x2fc   :  { %s3644_s22 = smov 2  }
 0x2fd   :  { %2376 = dma.vmem_to_hbm [thread:$0]  %s2369_s21, 32, %s2371_s20, [#allocation4], %s3643_s1, %s3643_s1, %s3644_s22  }
 0x2fe   :  { %3631 = dma.done.wait [#allocation4], 128  }
 0x2ff   :  { %3632 = vsyncadd [#allocation4], 4294967168 }
 0x300   :  { %2381 = vsyncpa [#allocation3], 1 }
 0x301   :  { %2382 = vsyncpa [#allocation6], 1 }
 0x302   :  { %2383 = vsyncpa [#allocation9], 1 }
 0x303   :  { %2384 = vsyncpa [#allocation4], 1 }

</bundles_post_ra>
